<compile_context>
chip_gen: v6e
topology: v6e:2x2x1
jax: 0.10.0
libtpu: 0.0.40
codegen_flags: <defaults>
</compile_context>

<pallas_src>
import jax
import jax.numpy as jnp
from jax.experimental import pallas as pl
from jax.experimental.pallas import tpu as pltpu

EPS = 1e-4
LANE = 128


def _round_up(x, m):
    return (x + m - 1) // m * m


# ----------------------------- Pallas kernel -------------------------------

def _matmul_relu_kernel(p_ref, w_ref, o_ref):
    """One (image, spatial-tile) step: ReLU([OCp,Kp] @ [Kp,TM]).

    p_ref: [1, Kp, TM]   bf16 im2col patches (row K is all-ones -> carries bias)
    w_ref: [OCp, Kp]     bf16 weights (column K holds the conv bias)
    o_ref: [1, OCp, TM]  f32 channel-major output tile (lane-dense TM)
    """
    acc = jnp.dot(w_ref[...], p_ref[0], preferred_element_type=jnp.float32)
    o_ref[0] = jnp.maximum(acc, 0.0)


# ------------------------------ Wrapper (glue) ------------------------------

def bin_conv2d(x, gamma, beta, w, b, *, stride, padding):
    """x: [N, C, H, W]; w: [OC, C, KH, KW]; b: [OC]; returns [N, OC, OH, OW]."""
    N, C, H, W = x.shape
    OC, _, KH, KW = w.shape
    OH = (H + 2 * padding - KH) // stride + 1
    OW = (W + 2 * padding - KW) // stride + 1
    K = C * KH * KW
    Kp = _round_up(K + 1, LANE)          # +1 "ones" row carries the conv bias
    OCp = _round_up(OC, LANE)            # lane-dense output channels
    M = OH * OW

    xf = x.astype(jnp.float32)

    # --- BatchNorm2d training-mode stats: one fused pass over x ---
    mean = jnp.mean(xf, axis=(0, 2, 3))                              # [C]
    mean_sq = jnp.mean(xf * xf, axis=(0, 2, 3))                      # [C]
    var = mean_sq - mean * mean                                      # biased var
    scale = gamma.astype(jnp.float32) * jax.lax.rsqrt(var + EPS)     # [C]
    shift = beta.astype(jnp.float32) - mean * scale                  # [C]

    # --- BN affine + conv zero-pad in normalized space (NCHW kept) ---
    x_bn = xf * scale[None, :, None, None] + shift[None, :, None, None]
    x_pad = jnp.pad(x_bn, ((0, 0), (0, 0), (padding, padding), (padding, padding)))

    # --- wrapper-side lane-dense im2col (tiny-C layer): [N, Kp, OH*OW] bf16 ---
    # k-index = (i*KW + j)*C + c ; m-index = oh*OW + ow
    taps = []
    for i in range(KH):
        for j in range(KW):
            taps.append(x_pad[:, :, i:i + stride * OH:stride, j:j + stride * OW:stride])
    patches = jnp.stack(taps, axis=1).reshape(N, K, M)
    patches = jnp.concatenate(
        [patches,
         jnp.ones((N, 1, M), jnp.float32),                 # bias row
         jnp.zeros((N, Kp - K - 1, M), jnp.float32)],
        axis=1).astype(jnp.bfloat16)

    # --- weight slab [OCp, Kp] with the bias folded into column K ---
    w_mat = w.astype(jnp.float32).transpose(0, 2, 3, 1).reshape(OC, K)
    w_mat = jnp.concatenate(
        [w_mat, b.astype(jnp.float32)[:, None],
         jnp.zeros((OC, Kp - K - 1), jnp.float32)], axis=1)
    w_mat = jnp.pad(w_mat, ((0, OCp - OC), (0, 0))).astype(jnp.bfloat16)

    # --- spatial tiling: biggest lane-dense tile that fits the VMEM budget ---
    budget = 20 * 1024 * 1024

    def step_bytes(tm):
        # double-buffered bf16 patches + resident bf16 weights (x2) + f32 out (x2) + acc
        return (2 * Kp * tm * 2) + (2 * OCp * Kp * 2) + (3 * OCp * tm * 4)

    cands = [M] + [m for m in (8192, 4096, 2048, 1024, 512, 256, 128) if M % m == 0]
    TM = next((m for m in cands if step_bytes(m) <= budget), min(cands))
    n_t = M // TM

    out = pl.pallas_call(
        _matmul_relu_kernel,
        out_shape=jax.ShapeDtypeStruct((N, OCp, M), jnp.float32),
        grid=(N, n_t),
        in_specs=[
            pl.BlockSpec((1, Kp, TM), lambda n, t: (n, 0, t)),   # patches tile
            pl.BlockSpec((OCp, Kp), lambda n, t: (0, 0)),        # weights (resident)
        ],
        out_specs=pl.BlockSpec((1, OCp, TM), lambda n, t: (n, 0, t)),
        compiler_params=pltpu.CompilerParams(
            dimension_semantics=("parallel", "parallel"),
            vmem_limit_bytes=32 * 1024 * 1024),
        cost_estimate=pl.CostEstimate(                 # useful (unpadded) work
            flops=2 * N * M * K * OC, transcendentals=0,
            bytes_accessed=2 * N * Kp * M + 2 * OCp * Kp + 4 * N * OC * M),
    )(patches, w_mat)

    # Channel-major output: drop the OC lane padding, reshape straight to NCHW.
    return out[:, :OC, :].reshape(N, OC, OH, OW)


# ------------------------------- Reference ----------------------------------

def reference(x, gamma, beta, w, b, *, stride, padding):
    C = x.shape[1]
    mean = x.mean(axis=(0, 2, 3), keepdims=True)
    var = ((x - mean) ** 2).mean(axis=(0, 2, 3), keepdims=True)
    xb = (x - mean) / jnp.sqrt(var + EPS) * gamma.reshape(1, C, 1, 1) + beta.reshape(1, C, 1, 1)
    y = jax.lax.conv_general_dilated(
        xb, w, (stride, stride), [(padding, padding), (padding, padding)],
        dimension_numbers=("NCHW", "OIHW", "NCHW"))
    return jnp.maximum(y + b.reshape(1, -1, 1, 1), 0.0)


# --------------------------------- Main --------------------------------------

if __name__ == "__main__":
    # BinConv2d(input_channels=4, output_channels=8, kernel_size=3,
    #           stride=1, padding=1, groups=1, dropout=0, Linear=False)
    N, C, H, W = 2, 4, 16, 16
    OC, KH, KW = 8, 3, 3
    stride, padding = 1, 1

    key = jax.random.PRNGKey(0)
    kx, kw_, kb, kg, kbe = jax.random.split(key, 5)
    x = jax.random.normal(kx, (N, C, H, W), dtype=jnp.float32)
    w = jax.random.normal(kw_, (OC, C, KH, KW), dtype=jnp.float32) * 0.1
    b = jax.random.normal(kb, (OC,), dtype=jnp.float32) * 0.1
    gamma = 1.0 + 0.1 * jax.random.normal(kg, (C,), dtype=jnp.float32)
    beta = 0.1 * jax.random.normal(kbe, (C,), dtype=jnp.float32)

    out = bin_conv2d(x, gamma, beta, w, b, stride=stride, padding=padding)
    out = jax.block_until_ready(out)

    ref = reference(x, gamma, beta, w, b, stride=stride, padding=padding)
    assert out.shape == (N, OC, H, W), out.shape
    # bf16 MXU operands (f32 accumulation) -> loosened tolerance.
    assert jnp.allclose(out, ref, atol=5e-2, rtol=5e-2), float(jnp.abs(out - ref).max())

    print("KERNEL_OK")
</pallas_src>

<mosaic_0001>
module attributes {stable_mosaic.version = 11 : i64} {
  func.func @_matmul_relu_kernel(%arg0: i32, %arg1: i32, %arg2: memref<1x128x256xbf16, #tpu.memory_space<vmem>>, %arg3: memref<128x128xbf16, #tpu.memory_space<vmem>>, %arg4: memref<1x128x256xf32, #tpu.memory_space<vmem>>) attributes {dimension_semantics = [#tpu.dimension_semantics<parallel>, #tpu.dimension_semantics<parallel>], iteration_bounds = array<i64: 2, 1>, scalar_prefetch = 0 : i64, scratch_operands = 0 : i64, tpu.core_type = #tpu.core_type<tc>, window_params = [{transform_indices = @transform_0, window_bounds = array<i64: 1, 128, 256>}, {pipeline_mode = #tpu.pipeline_mode<synchronous>, transform_indices = @transform_1, window_bounds = array<i64: 128, 128>}, {transform_indices = @transform_2, window_bounds = array<i64: 1, 128, 256>}]} {
    %c0 = arith.constant 0 : index
    %c0_0 = arith.constant 0 : index
    %0 = vector.load %arg3[%c0, %c0_0] : memref<128x128xbf16, #tpu.memory_space<vmem>>, vector<128x128xbf16>
    %c0_1 = arith.constant 0 : index
    %c0_2 = arith.constant 0 : index
    %c0_3 = arith.constant 0 : index
    %1 = vector.load %arg2[%c0_1, %c0_2, %c0_3] : memref<1x128x256xbf16, #tpu.memory_space<vmem>>, vector<1x128x256xbf16>
    %2 = vector.shape_cast %1 : vector<1x128x256xbf16> to vector<128x256xbf16>
    %cst = arith.constant dense<0.000000e+00> : vector<128x256xf32>
    %3 = tpu.matmul %0, %2, %cst {dimension_numbers = #tpu.dot_dimension_numbers<[1], [0], [0], [1], [0, 0, 1, 1], [], []>} : vector<128x128xbf16>, vector<128x256xbf16>, vector<128x256xf32> -> vector<128x256xf32>
    %cst_4 = arith.constant 0.000000e+00 : f32
    %4 = vector.broadcast %cst_4 : f32 to vector<128x256xf32>
    %5 = arith.maximumf %3, %4 : vector<128x256xf32>
    %c0_5 = arith.constant 0 : index
    %c0_6 = arith.constant 0 : index
    %c0_7 = arith.constant 0 : index
    %6 = vector.load %arg4[%c0_5, %c0_6, %c0_7] : memref<1x128x256xf32, #tpu.memory_space<vmem>>, vector<1x128x256xf32>
    %7 = vector.shape_cast %6 : vector<1x128x256xf32> to vector<128x256xf32>
    %8 = vector.shape_cast %5 : vector<128x256xf32> to vector<1x128x256xf32>
    tpu.vector_store %arg4[%c0_5, %c0_6, %c0_7], %8 {strides = array<i32>} : memref<1x128x256xf32, #tpu.memory_space<vmem>>, vector<1x128x256xf32>,
    return
  }
  func.func @transform_0(%arg0: i32, %arg1: i32) -> (i32, i32, i32) {
    %c0_i32 = arith.constant 0 : i32
    %c0_i32_0 = arith.constant 0 : i32
    return %arg0, %c0_i32, %arg1 : i32, i32, i32
  }
  func.func @transform_1(%arg0: i32, %arg1: i32) -> (i32, i32) {
    %c0_i32 = arith.constant 0 : i32
    %c0_i32_0 = arith.constant 0 : i32
    %c0_i32_1 = arith.constant 0 : i32
    return %c0_i32, %c0_i32_0 : i32, i32
  }
  func.func @transform_2(%arg0: i32, %arg1: i32) -> (i32, i32, i32) {
    %c0_i32 = arith.constant 0 : i32
    %c0_i32_0 = arith.constant 0 : i32
    return %arg0, %c0_i32, %arg1 : i32, i32, i32
  }
}

</mosaic_0001>

<bundles_post_ra>
// kernel: tpu_custom_call.1
= control target key start
LH: loop header
LB: loop body
LE: loop exit
PB: predicated region body
PF: predicated region fallthrough
CT: control target
= control target key end

     0   :  { %7 = vsyncpa [#allocation3], 0  ;;  %s1227_s0 = inlined_call_operand.hbm [shape: bf16[2,128,256], index: 0, kind: input, shape index: {}]   ;;  %s1228_s1 = inlined_call_operand.hbm [shape: bf16[128,128], index: 1, kind: input, shape index: {}]   ;;  %s1229_s2 = inlined_call_operand.hbm [shape: f32[2,128,256], index: 2, kind: output, shape index: {}]  }
   0x1   :  { %9 = vsyncpa [#allocation3 + $0x1], 0 }
   0x2   :  { %10 = vsyncpa [#allocation6], 0 }
   0x3   :  { %11 = vsyncpa [#allocation4], 0 }
   0x4   :  { %13 = vsyncpa [#allocation4 + $0x1], 0  ;;  %s984_s9 = smov 0   ;;  %s986_s10 = smov 0  }
   0x5   :  { %s988_s11 = smov 0   ;;  %s990_s12 = smov 0  }
   0x6   :  { %s992_s13 = smov 0   ;;  %s994_s14 = smov 0  }
   0x7 LB: > { %s648_s15 = sadd.s32 4294967295, %s957_s14   ;;  %s649_s16 = sadd.s32 4294967294, %s957_s14   ;;  %s957_s14 = sphi %s994_s14, %s19_s14   ;;  %s953_s13 = sphi %s992_s13, %s1247_s13   ;;  %s949_s12 = sphi %s990_s12, %s1246_s12   ;;  %s945_s11 = sphi %s988_s11, %s1245_s11   ;;  %s941_s10 = sphi %s986_s10, %s1244_s10   ;;  %s937_s9 = sphi %s984_s9, %s1243_s9  }
   0x8   : > { %p53_p0 = scmp.ne.s32.totalorder %s941_s10, %s937_s9  ;;  %p1018_p1 = scmp.eq.s32.totalorder %s648_s15, 0 }
   0x9   : > { %p1022_p2 = scmp.eq.s32.totalorder %s648_s15, 1  ;;  %p106_p3 = scmp.eq.s32.totalorder %s649_s16, 1 }
   0xa   : > { %p1028_p4 = por %p1018_p1, %p53_p0  ;;  %p650_p5 = scmp.ge.s32.totalorder %s957_s14, 1 }
   0xb   : > { %p1033_p6 = por %p106_p3, %p53_p0  ;;  %p113_p7 = scmp.lt.s32.totalorder %s957_s14, 3 }
   0xc   : > { %s1233_s19 = scalar_select %p1028_p4, 1, 0 }
   0xd   : > { %s1234_s20 = scalar_select %p1033_p6, 1, 0 }
   0xe   : > { %p1038_p8 = pnand %p650_p5, %p113_p7  ;;  %s959_s22 = smov [#allocation5]  }
   0xf   : > { %s125_s23 = sshll.u32 %s959_s22, 4  ;;  %s31_s25 = sadd.s32 1, %s953_s13  ;;  %s126_s23 = int_to_ptr.vmem [resolvable:$true] %s125_s23 }
  0x10   : > { %p715_p9 = pneg %p1038_p8  ;;  %s830_s26 = scalar_lea.vmem %s126_s23, 1024 }
  0x11   : > { %p831_p13 = scmp.ne.s32.totalorder %s126_s23, %s830_s26  ;;  %p838_p5 = scmp.lt.s32.totalorder %s126_s23, %s126_s23 }
  0x12   : > { %p1047_p11 = pnand %p715_p9, %p1018_p1  ;;  %p839_p7 = scmp.lt.s32.totalorder %s830_s26, %s830_s26 }
  0x14   : > { %p821_p12 = pneg %p1047_p11  ;;  %p840_p6 = por %p839_p7, %p838_p5 }
  0x16   : > { %p833_p0 = pnand %p831_p13, %p821_p12 }
  0x18   : > { %p834_p3 = pneg %p833_p0 }
  0x1a   : > { %p841_p4 = pnand %p840_p6, %p834_p3 }
  0x1c   : > { %844 = shalt.err (!%p841_p4)
}
  0x1d   : > { %s960_s27 = smov 64   ;;  %s961_s28 = smov 4  }
  0x1e   : > { %718 = dma.hbm_to_vmem [thread:$0]  (!%p1047_p11), %s1228_s1, 1024, %s126_s23, [#allocation6], %s960_s27, %s960_s27, %s961_s28  }
  0x1f   : > { %p33_p6 = scmp.ge.s32.totalorder %s31_s25, 2  ;;  %s40_s3 = sadd.s32 1, %s945_s11 }
  0x20   : > { %p47_p4 = scmp.ne.s32.totalorder %s945_s11, %s941_s10  ;;  %p48_p9 = scmp.eq.s32.totalorder %s957_s14, 0 }
  0x21   : > { %s1249_s25 = smov (%p33_p6, %s31_s25), 0  ;;  %p728_p0 = scmp.lt.s32.totalorder %s957_s14, 2 }
  0x22   : > { %p1065_p12 = por %p48_p9, %p47_p4  ;;  %p1071_p13 = por %p1022_p2, %p47_p4 }
  0x23   : > { %s35_s6 = ssub.s32 %s953_s13, %s1249_s25  ;;  %s139_s7 = sand.u32 1, %s945_s11  }
  0x24   : > { %p38_p11 = scmp.eq.s32.totalorder %s35_s6, 0  ;;  %s653_s8 = sshll.u32 %s139_s7, 7 }
  0x25   : > { %s689_s16 = sshll.u32 %s953_s13, 11  ;;  %s143_s26 = scalar_lea.vmem [#allocation2], %s653_s8 }
  0x26   : > { %s1080_s15 = scalar_select %p38_p11, %s945_s11, %s40_s3  }
  0x27   : > { %s151_s24 = scalar_lea.hbm %s1227_s0, %s689_s16  ;;  %s152_s27 = sshll.u32 %s143_s26, 4  ;;  %s153_s27 = int_to_ptr.vmem [resolvable:$true] %s152_s27 }
  0x28   : > { %p1088_p2 = pnand %p728_p0, %p1065_p12  ;;  %s140_s28 = scalar_lea.sflag [#allocation3], %s139_s7 }
  0x29   : > { %s858_s29 = scalar_lea.vmem %s153_s27, 2048  ;;  %s962_s30 = smov [#allocation2]  }
  0x2a   : > { %p847_p3 = pneg %p1088_p2  ;;  %p859_p5 = scmp.ne.s32.totalorder %s153_s27, %s858_s29 }
  0x2b   : > { %s863_s3 = sshll.u32 %s962_s30, 4  ;;  %s864_s3 = int_to_ptr.vmem [resolvable:$false] %s863_s3 }
  0x2c   : > { %p861_p7 = pnand %p859_p5, %p847_p3  ;;  %s865_s6 = scalar_lea.vmem %s864_s3, 4096 }
  0x2d   : > { %p866_p4 = scmp.lt.s32.totalorder %s153_s27, %s864_s3  ;;  %p867_p9 = scmp.lt.s32.totalorder %s865_s6, %s858_s29 }
  0x2e   : > { %p862_p6 = pneg %p861_p7 }
  0x2f   : > { %p868_p11 = por %p867_p9, %p866_p4 }
  0x31   : > { %p869_p10 = pnand %p868_p11, %p862_p6 }
  0x33   : > { %872 = shalt.err (!%p869_p10)
}
  0x34   : > { %s963_s4 = smov 128   ;;  %s964_s8 = smov 8  }
  0x35   : > { %722 = dma.hbm_to_vmem [thread:$0]  (!%p1088_p2), %s151_s24, 2048, %s153_s27, %s140_s28, %s963_s4, %s963_s4, %s964_s8  }
  0x36   : > { %164 = sbr.rel (%p1038_p8) target bundleno = 335 (0x14f), region = 28  ;;  %s1099_s7 = sand.u32 (!%p1038_p8), 1, %s941_s10  }
  0x37   : > { %s657_s16 = sshll.u32 (!%p1038_p8), %s1099_s7, 7  ;;  %s167_s22 = scalar_lea.sflag (!%p1038_p8), [#allocation3], %s1099_s7 }
  0x38   : > { %s1103_s23 = scalar_lea.vmem (!%p1038_p8), [#allocation2], %s657_s16  ;;  %p1240_p12 = scmp.ne.s32.totalorder (!%p1038_p8), %s1233_s19, 0 }
  0x3b   : > { %924 = dma.done.wait (%p1240_p12), %s167_s22, 2048  }
  0x3c   : > { %926 = vsyncadd (%p1240_p12), %s167_s22, 4294965248 }
  0x3d   : > { %928 = dma.done.wait (%p1018_p1), [#allocation6], 1024  }
  0x3e   : > { %930 = vsyncadd (%p1018_p1), [#allocation6], 4294966272  ;;  %v965_v0 = vmov 0   ;;  %v787_v1 = vld [vmem:[%s1103_s23 + $0x74] ss:$8 sps:$4 sm:$0xff]   ;;  %v811_v17 = vld [vmem:[#allocation5] sm:$0xff]  }
  0x3f   : > { %390 = vmatprep.mubr.bf16.mxu0 %v965_v0  ;;  %430 = vmatprep.mubr.bf16.mxu1 %v965_v0  ;;  %v789_v2 = vld [vmem:[%s1103_s23 + $0x70] ss:$8 sps:$4 sm:$0xff]   ;;  %v790_v3 = vld [vmem:[%s1103_s23 + $0x64] ss:$8 sps:$4 sm:$0xff]   ;;  %v792_v4 = vld [vmem:[%s1103_s23 + $0x60] ss:$8 sps:$4 sm:$0xff]  }
  0x40   : > { %358 = vmatprep.subr.bf16.mxu0 %v787_v1  ;;  %691 = vmatprep.subr.bf16.mxu1 %v787_v1  ;;  %v793_v5 = vld [vmem:[%s1103_s23 + $0x54] ss:$8 sps:$4 sm:$0xff]   ;;  %v795_v6 = vld [vmem:[%s1103_s23 + $0x50] ss:$8 sps:$4 sm:$0xff]   ;;  %v796_v7 = vld [vmem:[%s1103_s23 + $0x44] ss:$8 sps:$4 sm:$0xff]  }
  0x41   : > { %359 = vmatpush1.bf16.msra.mxu0 %v789_v2  ;;  %699 = vmatpush1.bf16.msra.mxu1 %v789_v2  ;;  %v798_v8 = vld [vmem:[%s1103_s23 + $0x40] ss:$8 sps:$4 sm:$0xff]   ;;  %v799_v9 = vld [vmem:[%s1103_s23 + $0x34] ss:$8 sps:$4 sm:$0xff]   ;;  %v801_v10 = vld [vmem:[%s1103_s23 + $0x30] ss:$8 sps:$4 sm:$0xff]  }
  0x42   : > { %360 = vmatprep.subr.bf16.mxu0 %v790_v3  ;;  %692 = vmatprep.subr.bf16.mxu1 %v790_v3  ;;  %v802_v11 = vld [vmem:[%s1103_s23 + $0x24] ss:$8 sps:$4 sm:$0xff]   ;;  %v804_v12 = vld [vmem:[%s1103_s23 + $0x20] ss:$8 sps:$4 sm:$0xff]   ;;  %v805_v13 = vld [vmem:[%s1103_s23 + $0x14] ss:$8 sps:$4 sm:$0xff]  }
  0x43   : > { %v807_v14 = vld [vmem:[%s1103_s23 + $0x10] ss:$8 sps:$4 sm:$0xff]   ;;  %v808_v15 = vld [vmem:[%s1103_s23 + $0x4] ss:$8 sps:$4 sm:$0xff]   ;;  %v810_v16 = vld [vmem:[%s1103_s23] ss:$8 sps:$4 sm:$0xff]  }
  0x44   : > { %v812_v18 = vld [vmem:[#allocation5 + $0x20] sm:$0xff]   ;;  %v813_v19 = vld [vmem:[#allocation5 + $0x8] sm:$0xff]   ;;  %v815_v21 = vld [vmem:[#allocation5 + $0x10] sm:$0xff]   ;;  %s659_s17 = sshll.u32 %s1099_s7, 8  ;;  %s690_s21 = sshll.u32 %s949_s12, 12 }
  0x45   : > { %361 = vmatpush1.bf16.msra.mxu0 %v792_v4  ;;  %700 = vmatpush1.bf16.msra.mxu1 %v792_v4  ;;  %v814_v20 = vld [vmem:[#allocation5 + $0x28] sm:$0xff]   ;;  %v816_v22 = vld [vmem:[#allocation5 + $0x30] sm:$0xff]   ;;  %v817_v23 = vld [vmem:[#allocation5 + $0x18] sm:$0xff]   ;;  %s1138_s19 = scalar_lea.vmem [#allocation7], %s659_s17  ;;  %s1173_s18 = scalar_lea.hbm %s1229_s2, %s690_s21 }
  0x46   : > { %362 = vmatprep.subr.bf16.mxu0 %v793_v5  ;;  %693 = vmatprep.subr.bf16.mxu1 %v793_v5  ;;  %v818_v24 = vld [vmem:[#allocation5 + $0x38] sm:$0xff]   ;;  %s551_s24 = sshll.u32 %s1138_s19, 4  ;;  %s536_s12 = scalar_lea.sflag [#allocation4], %s1099_s7  ;;  %s1175_s24 = int_to_ptr.vmem [resolvable:$true] %s551_s24 }
  0x47   : > { %s873_s28 = scalar_lea.vmem %s1175_s24, 4096  ;;  %s966_s29 = smov [#allocation7]  }
  0x48   : > { %p874_p1 = scmp.ne.s32.totalorder %s1175_s24, %s873_s28  ;;  %s877_s30 = sshll.u32 %s966_s29, 4  ;;  %s878_s30 = int_to_ptr.vmem [resolvable:$false] %s877_s30 }
  0x49   : > { %363 = vmatpush1.bf16.msra.mxu0 %v795_v6  ;;  %701 = vmatpush1.bf16.msra.mxu1 %v795_v6  ;;  %s879_s3 = scalar_lea.vmem %s878_s30, 8192  ;;  %p880_p0 = scmp.lt.s32.totalorder %s1175_s24, %s878_s30 }
  0x4a   : > { %364 = vmatprep.subr.bf16.mxu0 %v796_v7  ;;  %694 = vmatprep.subr.bf16.mxu1 %v796_v7  ;;  %p875_p8 = pnand %p874_p1, %p1071_p13  ;;  %p881_p2 = scmp.lt.s32.totalorder %s879_s3, %s873_s28 }
  0x4c   : > { %p876_p10 = pneg %p875_p8  ;;  %p882_p3 = por %p881_p2, %p880_p0 }
  0x4d   : > { %365 = vmatpush1.bf16.msra.mxu0 %v798_v8  ;;  %702 = vmatpush1.bf16.msra.mxu1 %v798_v8 }
  0x4e   : > { %366 = vmatprep.subr.bf16.mxu0 %v799_v9  ;;  %695 = vmatprep.subr.bf16.mxu1 %v799_v9  ;;  %p883_p5 = pnand %p882_p3, %p876_p10 }
  0x51   : > { %367 = vmatpush1.bf16.msra.mxu0 %v801_v10  ;;  %703 = vmatpush1.bf16.msra.mxu1 %v801_v10 }
  0x52   : > { %368 = vmatprep.subr.bf16.mxu0 %v802_v11  ;;  %696 = vmatprep.subr.bf16.mxu1 %v802_v11 }
  0x55   : > { %369 = vmatpush1.bf16.msra.mxu0 %v804_v12  ;;  %704 = vmatpush1.bf16.msra.mxu1 %v804_v12 }
  0x56   : > { %370 = vmatprep.subr.bf16.mxu0 %v805_v13  ;;  %697 = vmatprep.subr.bf16.mxu1 %v805_v13 }
  0x59   : > { %371 = vmatpush1.bf16.msra.mxu0 %v807_v14  ;;  %705 = vmatpush1.bf16.msra.mxu1 %v807_v14 }
  0x5a   : > { %372 = vmatprep.subr.bf16.mxu0 %v808_v15  ;;  %698 = vmatprep.subr.bf16.mxu1 %v808_v15 }
  0x5d   : > { %373 = vmatpush1.bf16.msra.mxu0 %v810_v16  ;;  %706 = vmatpush1.bf16.msra.mxu1 %v810_v16 }
  0x60   : > { %391 = vmatmul.mubr.bf16.vlgmr.msra.gmra.mxu0 %v811_v17  ;;  %431 = vmatmul.mubr.bf16.vlgmr.msra.gmra.mxu1 %v812_v18 }
  0x61   : > { %400 = vmatprep.mubr.bf16.mxu0 %v965_v0  ;;  %440 = vmatprep.mubr.bf16.mxu1 %v965_v0 }
  0x68   : > { %401 = vmatmul.mubr.bf16.gmra.mxu0 %v813_v19  ;;  %441 = vmatmul.mubr.bf16.gmra.mxu1 %v814_v20 }
  0x69   : > { %410 = vmatprep.mubr.bf16.mxu0 %v965_v0  ;;  %450 = vmatprep.mubr.bf16.mxu1 %v965_v0 }
  0x70   : > { %411 = vmatmul.mubr.bf16.gmra.mxu0 %v815_v21  ;;  %451 = vmatmul.mubr.bf16.gmra.mxu1 %v816_v22 }
  0x71   : > { %420 = vmatprep.mubr.bf16.mxu0 %v965_v0  ;;  %460 = vmatprep.mubr.bf16.mxu1 %v965_v0 }
  0x78   : > { %421 = vmatmul.mubr.bf16.gmra.mxu0 %v817_v23  ;;  %461 = vmatmul.mubr.bf16.gmra.mxu1 %v818_v24 }
 0x120   : > { %v392_v25 = vpop.f32.mrf.mxu0  ;;  %v432_v26 = vpop.f32.mrf.mxu1 }
 0x121   : > { %v471_v27 = vmax.f32 %v392_v25, 0.0  ;;  %v487_v28 = vmax.f32 %v432_v26, 0.0 }
 0x122   : > { %v394_v29 = vpop.f32.mrf.mxu0  ;;  %v434_v30 = vpop.f32.mrf.mxu1 }
 0x123   : > { %503 = vst [vmem:[%s1138_s19] sm:$0xff] %v471_v27  ;;  %519 = vst [vmem:[%s1138_s19 + $0x80] sm:$0xff] %v487_v28  ;;  %v472_v31 = vmax.f32 %v394_v29, 0.0  ;;  %v488_v32 = vmax.f32 %v434_v30, 0.0 }
 0x124   : > { %v396_v33 = vpop.f32.mrf.mxu0  ;;  %v436_v34 = vpop.f32.mrf.mxu1 }
 0x125   : > { %504 = vst [vmem:[%s1138_s19 + $0x8] sm:$0xff] %v472_v31  ;;  %520 = vst [vmem:[%s1138_s19 + $0x88] sm:$0xff] %v488_v32  ;;  %v473_v35 = vmax.f32 %v396_v33, 0.0  ;;  %v489_v36 = vmax.f32 %v436_v34, 0.0 }
 0x126   : > { %v398_v37 = vpop.f32.mrf.mxu0  ;;  %v438_v38 = vpop.f32.mrf.mxu1 }
 0x127   : > { %505 = vst [vmem:[%s1138_s19 + $0x10] sm:$0xff] %v473_v35  ;;  %521 = vst [vmem:[%s1138_s19 + $0x90] sm:$0xff] %v489_v36  ;;  %v474_v39 = vmax.f32 %v398_v37, 0.0  ;;  %v490_v40 = vmax.f32 %v438_v38, 0.0 }
 0x128   : > { %v402_v41 = vpop.f32.mrf.mxu0  ;;  %v442_v42 = vpop.f32.mrf.mxu1 }
 0x129   : > { %506 = vst [vmem:[%s1138_s19 + $0x18] sm:$0xff] %v474_v39  ;;  %522 = vst [vmem:[%s1138_s19 + $0x98] sm:$0xff] %v490_v40  ;;  %v475_v43 = vmax.f32 %v402_v41, 0.0  ;;  %v491_v44 = vmax.f32 %v442_v42, 0.0 }
 0x12a   : > { %v404_v45 = vpop.f32.mrf.mxu0  ;;  %v444_v46 = vpop.f32.mrf.mxu1 }
 0x12b   : > { %507 = vst [vmem:[%s1138_s19 + $0x20] sm:$0xff] %v475_v43  ;;  %523 = vst [vmem:[%s1138_s19 + $0xa0] sm:$0xff] %v491_v44  ;;  %v476_v47 = vmax.f32 %v404_v45, 0.0  ;;  %v492_v48 = vmax.f32 %v444_v46, 0.0 }
 0x12c   : > { %v406_v49 = vpop.f32.mrf.mxu0  ;;  %v446_v50 = vpop.f32.mrf.mxu1 }
 0x12d   : > { %508 = vst [vmem:[%s1138_s19 + $0x28] sm:$0xff] %v476_v47  ;;  %524 = vst [vmem:[%s1138_s19 + $0xa8] sm:$0xff] %v492_v48  ;;  %v477_v51 = vmax.f32 %v406_v49, 0.0  ;;  %v493_v52 = vmax.f32 %v446_v50, 0.0 }
 0x12e   : > { %v408_v53 = vpop.f32.mrf.mxu0  ;;  %v448_v54 = vpop.f32.mrf.mxu1 }
 0x12f   : > { %509 = vst [vmem:[%s1138_s19 + $0x30] sm:$0xff] %v477_v51  ;;  %525 = vst [vmem:[%s1138_s19 + $0xb0] sm:$0xff] %v493_v52  ;;  %v478_v55 = vmax.f32 %v408_v53, 0.0  ;;  %v494_v56 = vmax.f32 %v448_v54, 0.0 }
 0x130   : > { %v412_v57 = vpop.f32.mrf.mxu0  ;;  %v452_v58 = vpop.f32.mrf.mxu1 }
 0x131   : > { %510 = vst [vmem:[%s1138_s19 + $0x38] sm:$0xff] %v478_v55  ;;  %526 = vst [vmem:[%s1138_s19 + $0xb8] sm:$0xff] %v494_v56  ;;  %v479_v59 = vmax.f32 %v412_v57, 0.0  ;;  %v495_v60 = vmax.f32 %v452_v58, 0.0 }
 0x132   : > { %v414_v61 = vpop.f32.mrf.mxu0  ;;  %v454_v62 = vpop.f32.mrf.mxu1 }
 0x133   : > { %511 = vst [vmem:[%s1138_s19 + $0x40] sm:$0xff] %v479_v59  ;;  %527 = vst [vmem:[%s1138_s19 + $0xc0] sm:$0xff] %v495_v60  ;;  %v480_v63 = vmax.f32 %v414_v61, 0.0  ;;  %v496_v0 = vmax.f32 %v454_v62, 0.0 }
 0x134   : > { %v416_v1 = vpop.f32.mrf.mxu0  ;;  %v456_v2 = vpop.f32.mrf.mxu1 }
 0x135   : > { %512 = vst [vmem:[%s1138_s19 + $0x48] sm:$0xff] %v480_v63  ;;  %528 = vst [vmem:[%s1138_s19 + $0xc8] sm:$0xff] %v496_v0  ;;  %v481_v3 = vmax.f32 %v416_v1, 0.0  ;;  %v497_v4 = vmax.f32 %v456_v2, 0.0 }
 0x136   : > { %v418_v5 = vpop.f32.mrf.mxu0  ;;  %v458_v6 = vpop.f32.mrf.mxu1 }
 0x137   : > { %513 = vst [vmem:[%s1138_s19 + $0x50] sm:$0xff] %v481_v3  ;;  %529 = vst [vmem:[%s1138_s19 + $0xd0] sm:$0xff] %v497_v4  ;;  %v482_v7 = vmax.f32 %v418_v5, 0.0  ;;  %v498_v8 = vmax.f32 %v458_v6, 0.0 }
 0x138   : > { %v422_v9 = vpop.f32.mrf.mxu0  ;;  %v462_v10 = vpop.f32.mrf.mxu1 }
 0x139   : > { %514 = vst [vmem:[%s1138_s19 + $0x58] sm:$0xff] %v482_v7  ;;  %530 = vst [vmem:[%s1138_s19 + $0xd8] sm:$0xff] %v498_v8  ;;  %v483_v11 = vmax.f32 %v422_v9, 0.0  ;;  %v499_v12 = vmax.f32 %v462_v10, 0.0 }
 0x13a   : > { %v424_v13 = vpop.f32.mrf.mxu0  ;;  %v464_v14 = vpop.f32.mrf.mxu1 }
 0x13b   : > { %515 = vst [vmem:[%s1138_s19 + $0x60] sm:$0xff] %v483_v11  ;;  %531 = vst [vmem:[%s1138_s19 + $0xe0] sm:$0xff] %v499_v12  ;;  %v484_v15 = vmax.f32 %v424_v13, 0.0  ;;  %v500_v16 = vmax.f32 %v464_v14, 0.0 }
 0x13c   : > { %v426_v17 = vpop.f32.mrf.mxu0  ;;  %v466_v18 = vpop.f32.mrf.mxu1 }
 0x13d   : > { %516 = vst [vmem:[%s1138_s19 + $0x68] sm:$0xff] %v484_v15  ;;  %532 = vst [vmem:[%s1138_s19 + $0xe8] sm:$0xff] %v500_v16  ;;  %v485_v19 = vmax.f32 %v426_v17, 0.0  ;;  %v501_v20 = vmax.f32 %v466_v18, 0.0 }
 0x13e   : > { %v428_v21 = vpop.f32.mrf.mxu0  ;;  %v468_v22 = vpop.f32.mrf.mxu1 }
 0x13f   : > { %517 = vst [vmem:[%s1138_s19 + $0x70] sm:$0xff] %v485_v19  ;;  %533 = vst [vmem:[%s1138_s19 + $0xf0] sm:$0xff] %v501_v20  ;;  %v486_v23 = vmax.f32 %v428_v21, 0.0  ;;  %v502_v24 = vmax.f32 %v468_v22, 0.0 }
 0x141   : > { %518 = vst [vmem:[%s1138_s19 + $0x78] sm:$0xff] %v486_v23  ;;  %534 = vst [vmem:[%s1138_s19 + $0xf8] sm:$0xff] %v502_v24 }
 0x142   : > { %886 = shalt.err (!%p883_p5)
}
 0x143   : > { %s887_s6 = scalar_lea.hbm %s1173_s18, 4096  ;;  %s891_s16 = scalar_lea.hbm %s1229_s2, 8192 }
 0x144   : > { %p888_p7 = scmp.ne.s32.totalorder %s1173_s18, %s887_s6  ;;  %p892_p9 = scmp.lt.s32.totalorder %s1173_s18, %s1229_s2 }
 0x145   : > { %p893_p11 = scmp.lt.s32.totalorder %s891_s16, %s887_s6 }
 0x146   : > { %p889_p6 = pnand %p888_p7, %p1071_p13 }
 0x147   : > { %p894_p12 = por %p893_p11, %p892_p9 }
 0x148   : > { %p890_p4 = pneg %p889_p6 }
 0x14a   : > { %p895_p1 = pnand %p894_p12, %p890_p4 }
 0x14c   : > { %898 = shalt.err (!%p895_p1)
}
 0x14d   : > { %s967_s17 = smov 256   ;;  %s968_s19 = smov 16  }
 0x14e   : > { %713 = dma.vmem_to_hbm [thread:$0]  (%p1071_p13), %s1175_s24, 4096, %s1173_s18, %s536_s12, %s967_s17, %s967_s17, %s968_s19  }
 0x14f PF: > { %s566_s21 = sand.u32 1, %s937_s9   ;;  %p1241_p8 = scmp.ne.s32.totalorder %s1234_s20, 0 }
 0x150   : > { %p1242_p10 = scmp.ge.s32.totalorder %s957_s14, 2  ;;  %s567_s26 = scalar_lea.sflag [#allocation4], %s566_s21 }
 0x152   : > { %p724_p0 = pnand %p1242_p10, %p1241_p8 }
 0x154   : > { %p725_p2 = pneg %p724_p0 }
 0x156   : > { %932 = dma.done.wait (%p725_p2), %s567_s26, 4096  }
 0x157   : > { %934 = vsyncadd (%p725_p2), %s567_s26, 4294963200  ;;  %s19_s14 = sadd.s32 1, %s957_s14   ;;  %s1243_s9 = smov %s941_s10 }
 0x158   : > { %p16_p3 = scmp.ge.s32.totalorder %s19_s14, 4   ;;  %s1244_s10 = smov %s945_s11 }
 0x159   : > { %s1245_s11 = smov %s1080_s15  ;;  %s1246_s12 = smov %s953_s13 }
 0x15a   : > { %s1247_s13 = smov %s1249_s25  ;;  %18 = sbr.rel (!%p16_p3) target bundleno = 7 (0x7), region = 77 }
 0x15f   :  { %572 = vsyncpa [#allocation3], 1 }
 0x160   :  { %574 = vsyncpa [#allocation3 + $0x1], 1 }
 0x161   :  { %575 = vsyncpa [#allocation6], 1 }
 0x162   :  { %576 = vsyncpa [#allocation4], 1 }
 0x163   :  { %578 = vsyncpa [#allocation4 + $0x1], 1 }

</bundles_post_ra>
